<compile_context>
chip_gen: v7x
topology: tpu7x:2x2x1
jax: 0.10.0
libtpu: 0.0.40
codegen_flags: <defaults>
</compile_context>

<pallas_src>
import jax
import jax.numpy as jnp
from jax.experimental import pallas as pl
from jax.experimental.pallas import tpu as pltpu

SUBLANE = 8


def _round_up(v, m):
    return ((v + m - 1) // m) * m


# ----------------------------------------------------------------------------
# Pallas kernel: fused linear1 + ReLU + linear2 + sigmoid on one batch tile.
# ----------------------------------------------------------------------------
def _vnet_kernel(x_ref, w1_ref, b1_ref, w2_ref, b2_ref, o_ref):
    # (tile_n, d_in) @ (d_in, hidden) -> (tile_n, hidden); MXU, f32 accumulate.
    h = jnp.dot(x_ref[...], w1_ref[...], preferred_element_type=jnp.float32)
    h = jnp.maximum(h + b1_ref[...], 0.0)                   # bias + ReLU (VPU)
    # (tile_n, hidden) @ (hidden, d_out) -> (tile_n, d_out)
    y = jnp.dot(h, w2_ref[...], preferred_element_type=jnp.float32) + b2_ref[...]
    # Exact sigmoid (matches F.sigmoid); exp goes to the EUP.
    o_ref[...] = 1.0 / (1.0 + jnp.exp(-y))


# ----------------------------------------------------------------------------
# Wrapper: layout glue (torch (out,in) -> (in,out) weights), batch tiling.
# ----------------------------------------------------------------------------
def vnet_forward(params, x, *, tile_n=512):
    """VNet forward.  x: (N, input).  Weights in PyTorch (out, in) layout."""
    w1, b1, w2, b2 = params['w1'], params['b1'], params['w2'], params['b2']
    n, d_in = x.shape
    hidden = w1.shape[0]
    d_out = w2.shape[0]
    f32 = jnp.float32

    # Batch tile: multiple of 8 sublanes; keep >= 2 grid steps when the batch
    # allows it so the "parallel" axis can shard across v7x's two TensorCores.
    n_ceil = _round_up(n, SUBLANE)
    half = _round_up(pl.cdiv(n_ceil, 2), SUBLANE)
    tile_n = max(SUBLANE, min(_round_up(tile_n, SUBLANE), half))
    n_pad = _round_up(n, tile_n)

    x = x.astype(f32)
    if n_pad != n:
        x = jnp.pad(x, ((0, n_pad - n), (0, 0)))  # batch-only pad; sliced off below

    # Layout glue only (no lane/feature padding).
    w1_t = w1.T.astype(f32)                       # (d_in, hidden)
    b1_r = b1.astype(f32).reshape(1, hidden)      # (1, hidden)
    w2_t = w2.T.astype(f32)                       # (hidden, d_out)
    b2_r = b2.astype(f32).reshape(1, d_out)       # (1, d_out)

    grid = (n_pad // tile_n,)
    flops = 2 * n_pad * d_in * hidden + 2 * n_pad * hidden * d_out
    bytes_accessed = 4 * (n_pad * d_in + d_in * hidden + hidden
                          + hidden * d_out + d_out + n_pad * d_out)

    out = pl.pallas_call(
        _vnet_kernel,
        out_shape=jax.ShapeDtypeStruct((n_pad, d_out), f32),
        grid_spec=pltpu.PrefetchScalarGridSpec(
            num_scalar_prefetch=0,
            grid=grid,
            in_specs=[
                # x: tiled over the batch axis, true feature width.
                pl.BlockSpec((tile_n, d_in), lambda i: (i, 0)),
                # weights / biases: true shapes, resident across the grid.
                pl.BlockSpec((d_in, hidden), lambda i: (0, 0)),
                pl.BlockSpec((1, hidden), lambda i: (0, 0)),
                pl.BlockSpec((hidden, d_out), lambda i: (0, 0)),
                pl.BlockSpec((1, d_out), lambda i: (0, 0)),
            ],
            out_specs=pl.BlockSpec((tile_n, d_out), lambda i: (i, 0)),
        ),
        compiler_params=pltpu.CompilerParams(
            dimension_semantics=("parallel",)),
        cost_estimate=pl.CostEstimate(
            flops=flops,
            transcendentals=n_pad * d_out,
            bytes_accessed=bytes_accessed),
    )(x, w1_t, b1_r, w2_t, b2_r)

    if n_pad != n:
        out = out[:n]
    return out


# ----------------------------------------------------------------------------
# Pure-JAX reference (correctness check against the kernel).
# ----------------------------------------------------------------------------
def vnet_reference(params, x):
    h = jnp.maximum(x @ params['w1'].T + params['b1'], 0.0)
    y = h @ params['w2'].T + params['b2']
    return jax.nn.sigmoid(y)


# ----------------------------------------------------------------------------
# Deterministic parameter init (nn.Linear default: U(-1/sqrt(fan_in), ...)).
# ----------------------------------------------------------------------------
def init_params(key, d_in, hidden, d_out):
    k1, k2, k3, k4 = jax.random.split(key, 4)
    bound1 = 1.0 / (d_in ** 0.5)
    bound2 = 1.0 / (hidden ** 0.5)
    return {
        'w1': jax.random.uniform(k1, (hidden, d_in), jnp.float32,
                                 -bound1, bound1),
        'b1': jax.random.uniform(k2, (hidden,), jnp.float32, -bound1, bound1),
        'w2': jax.random.uniform(k3, (d_out, hidden), jnp.float32,
                                 -bound2, bound2),
        'b2': jax.random.uniform(k4, (d_out,), jnp.float32, -bound2, bound2),
    }


if __name__ == "__main__":
    key = jax.random.PRNGKey(0)
    pkey, xkey = jax.random.split(key)

    # VNet(input=4, hidden1=32, output=1); batch of 256 -> 2 grid steps.
    d_in, hidden, d_out = 4, 32, 1
    n = 256
    params = init_params(pkey, d_in, hidden, d_out)
    x = jax.random.normal(xkey, (n, d_in), jnp.float32)

    out = vnet_forward(params, x)
    out = jax.block_until_ready(out)

    assert out.shape == (n, d_out), out.shape
    assert bool(jnp.all(jnp.isfinite(out)))

    ref = jax.block_until_ready(vnet_reference(params, x))
    assert bool(jnp.allclose(out, ref, atol=1e-4, rtol=1e-4)), (
        float(jnp.max(jnp.abs(out - ref))))

    print("KERNEL_OK")
</pallas_src>

<mosaic_0001>
module attributes {stable_mosaic.version = 11 : i64} {
  func.func @_vnet_kernel(%arg0: i32, %arg1: memref<128x4xf32, #tpu.memory_space<vmem>>, %arg2: memref<4x32xf32, #tpu.memory_space<vmem>>, %arg3: memref<1x32xf32, #tpu.memory_space<vmem>>, %arg4: memref<32x1xf32, #tpu.memory_space<vmem>>, %arg5: memref<1x1xf32, #tpu.memory_space<vmem>>, %arg6: memref<128x1xf32, #tpu.memory_space<vmem>>) attributes {dimension_semantics = [#tpu.dimension_semantics<parallel>], iteration_bounds = array<i64: 2>, scalar_prefetch = 0 : i64, scratch_operands = 0 : i64, tpu.core_type = #tpu.core_type<tc>, window_params = [{transform_indices = @transform_0, window_bounds = array<i64: 128, 4>}, {pipeline_mode = #tpu.pipeline_mode<synchronous>, transform_indices = @transform_1, window_bounds = array<i64: 4, 32>}, {pipeline_mode = #tpu.pipeline_mode<synchronous>, transform_indices = @transform_2, window_bounds = array<i64: 1, 32>}, {pipeline_mode = #tpu.pipeline_mode<synchronous>, transform_indices = @transform_3, window_bounds = array<i64: 32, 1>}, {pipeline_mode = #tpu.pipeline_mode<synchronous>, transform_indices = @transform_4, window_bounds = array<i64: 1, 1>}, {transform_indices = @transform_5, window_bounds = array<i64: 128, 1>}]} {
    %c0 = arith.constant 0 : index
    %c0_0 = arith.constant 0 : index
    %0 = vector.load %arg1[%c0, %c0_0] : memref<128x4xf32, #tpu.memory_space<vmem>>, vector<128x4xf32>
    %c0_1 = arith.constant 0 : index
    %c0_2 = arith.constant 0 : index
    %1 = vector.load %arg2[%c0_1, %c0_2] : memref<4x32xf32, #tpu.memory_space<vmem>>, vector<4x32xf32>
    %cst = arith.constant dense<0.000000e+00> : vector<128x32xf32>
    %2 = tpu.matmul %0, %1, %cst {dimension_numbers = #tpu.dot_dimension_numbers<[1], [0], [0], [1], [0, 0, 1, 1], [], []>} : vector<128x4xf32>, vector<4x32xf32>, vector<128x32xf32> -> vector<128x32xf32>
    %c0_3 = arith.constant 0 : index
    %c0_4 = arith.constant 0 : index
    %3 = vector.load %arg3[%c0_3, %c0_4] : memref<1x32xf32, #tpu.memory_space<vmem>>, vector<1x32xf32>
    %4 = vector.broadcast %3 : vector<1x32xf32> to vector<128x32xf32>
    %5 = arith.addf %2, %4 : vector<128x32xf32>
    %cst_5 = arith.constant 0.000000e+00 : f32
    %6 = vector.broadcast %cst_5 : f32 to vector<128x32xf32>
    %7 = arith.maximumf %5, %6 : vector<128x32xf32>
    %c0_6 = arith.constant 0 : index
    %c0_7 = arith.constant 0 : index
    %8 = vector.load %arg4[%c0_6, %c0_7] : memref<32x1xf32, #tpu.memory_space<vmem>>, vector<32x1xf32>
    %cst_8 = arith.constant dense<0.000000e+00> : vector<128x1xf32>
    %9 = tpu.matmul %7, %8, %cst_8 {dimension_numbers = #tpu.dot_dimension_numbers<[1], [0], [0], [1], [0, 0, 1, 1], [], []>} : vector<128x32xf32>, vector<32x1xf32>, vector<128x1xf32> -> vector<128x1xf32>
    %c0_9 = arith.constant 0 : index
    %c0_10 = arith.constant 0 : index
    %10 = vector.load %arg5[%c0_9, %c0_10] : memref<1x1xf32, #tpu.memory_space<vmem>>, vector<1x1xf32>
    %11 = vector.broadcast %10 : vector<1x1xf32> to vector<128x1xf32>
    %12 = arith.addf %9, %11 : vector<128x1xf32>
    %cst_11 = arith.constant 0.000000e+00 : f32
    %13 = vector.broadcast %cst_11 : f32 to vector<128x1xf32>
    %14 = arith.subf %13, %12 : vector<128x1xf32>
    %15 = math.exp %14 : vector<128x1xf32>
    %cst_12 = arith.constant 1.000000e+00 : f32
    %16 = vector.broadcast %cst_12 : f32 to vector<128x1xf32>
    %17 = arith.addf %16, %15 : vector<128x1xf32>
    %cst_13 = arith.constant 1.000000e+00 : f32
    %18 = vector.broadcast %cst_13 : f32 to vector<128x1xf32>
    %19 = arith.divf %18, %17 : vector<128x1xf32>
    %c0_14 = arith.constant 0 : index
    %c0_15 = arith.constant 0 : index
    %20 = vector.load %arg6[%c0_14, %c0_15] : memref<128x1xf32, #tpu.memory_space<vmem>>, vector<128x1xf32>
    tpu.vector_store %arg6[%c0_14, %c0_15], %19 {strides = array<i32>} : memref<128x1xf32, #tpu.memory_space<vmem>>, vector<128x1xf32>,
    return
  }
  func.func @transform_0(%arg0: i32) -> (i32, i32) {
    %c0_i32 = arith.constant 0 : i32
    %c0_i32_0 = arith.constant 0 : i32
    return %arg0, %c0_i32 : i32, i32
  }
  func.func @transform_1(%arg0: i32) -> (i32, i32) {
    %c0_i32 = arith.constant 0 : i32
    %c0_i32_0 = arith.constant 0 : i32
    %c0_i32_1 = arith.constant 0 : i32
    return %c0_i32, %c0_i32_0 : i32, i32
  }
  func.func @transform_2(%arg0: i32) -> (i32, i32) {
    %c0_i32 = arith.constant 0 : i32
    %c0_i32_0 = arith.constant 0 : i32
    %c0_i32_1 = arith.constant 0 : i32
    return %c0_i32, %c0_i32_0 : i32, i32
  }
  func.func @transform_3(%arg0: i32) -> (i32, i32) {
    %c0_i32 = arith.constant 0 : i32
    %c0_i32_0 = arith.constant 0 : i32
    %c0_i32_1 = arith.constant 0 : i32
    return %c0_i32, %c0_i32_0 : i32, i32
  }
  func.func @transform_4(%arg0: i32) -> (i32, i32) {
    %c0_i32 = arith.constant 0 : i32
    %c0_i32_0 = arith.constant 0 : i32
    %c0_i32_1 = arith.constant 0 : i32
    return %c0_i32, %c0_i32_0 : i32, i32
  }
  func.func @transform_5(%arg0: i32) -> (i32, i32) {
    %c0_i32 = arith.constant 0 : i32
    %c0_i32_0 = arith.constant 0 : i32
    return %arg0, %c0_i32 : i32, i32
  }
}

</mosaic_0001>

<bundles_post_ra>
// kernel: tpu_custom_call.1
= control target key start
LH: loop header
LB: loop body
LE: loop exit
PB: predicated region body
PF: predicated region fallthrough
CT: control target
= control target key end

     0   :  { %s1104_s20 = smov 0   ;;  %s1248_s0 = inlined_call_operand.vmem [shape: f32[256,4], index: 0, kind: input, shape index: {}]   ;;  %s1249_s1 = inlined_call_operand.vmem [shape: f32[4,32], index: 1, kind: input, shape index: {}]   ;;  %s1250_s2 = inlined_call_operand.vmem [shape: f32[1,32], index: 2, kind: input, shape index: {}]   ;;  %s1251_s3 = inlined_call_operand.vmem [shape: f32[32,1], index: 3, kind: input, shape index: {}]   ;;  %s1252_s4 = inlined_call_operand.<no memory space> [shape: f32[1,1], index: 4, kind: input, shape index: {}]   ;;  %s1253_s5 = inlined_call_operand.vmem [shape: f32[256,1], index: 5, kind: output, shape index: {}]  }
   0x1   :  { %v10_v0 = vstv %s1252_s4 }
   0x2   :  { %11 = vst [vmem:[#allocation2] sm:$0x1] %v10_v0 }
   0x3 LB: > { %s842_s21 = sadd.s32 4294967295, %s1069_s20   ;;  %p846_p0 = scmp.ge.s32.totalorder %s1069_s20, 1  ;;  %s1069_s20 = sphi %s1104_s20, %s17_s20  }
   0x4   : > { %p190_p1 = scmp.lt.s32.totalorder %s1069_s20, 3 }
   0x6   : > { %p191_p2 = pnand %p846_p0, %p190_p1 }
   0x7   : > { %v246_v1 = vld [vmem:[%s1249_s1] sm:$0xf] (!%p191_p2)  ;;  %vm303_vm0 = vcmask (!%p191_p2), 1043456   ;;  %s847_s4 = sshll.u32 (!%p191_p2), %s842_s21, 4  ;;  %v469_v3 = vld [vmem:[%s1251_s3 + $0x8] sm:$0xff] (!%p191_p2)  ;;  %vm254_vm1 = vcmask (!%p191_p2), 31744  }
   0x8   : > { %194 = sbr.rel (%p191_p2) target bundleno = 512 (0x200), region = 40  ;;  %v468_v2 = vld [vmem:[%s1251_s3] sm:$0xff] (!%p191_p2)  ;;  %925 = vmatprep.subr.msk.mxu0 (!%p191_p2), %vm303_vm0, %v246_v1  ;;  %p219_p3 = scmp.lt.s32.totalorder (!%p191_p2), %s847_s4, 31  ;;  %v470_v21 = vld [vmem:[%s1251_s3 + $0x10] sm:$0xff] (!%p191_p2)  ;;  %v471_v22 = vld [vmem:[%s1251_s3 + $0x18] sm:$0xff] (!%p191_p2)  ;;  %vm479_vm2 = vcmask (!%p191_p2), 261120  }
   0x9   : > { %926 = vmatpush3.msk.msra.mxu0 (!%p191_p2), %vm303_vm0, %v246_v1  ;;  %v983_v4 = vpack.c.bf16 (!%p191_p2), %v469_v3, %v468_v2  ;;  %v987_v23 = vpack.c.bf16 (!%p191_p2), %v471_v22, %v470_v21  ;;  %v851_v24 = vld [vmem:[%s1250_s2] ss:$0 sm:$0xff] (!%p191_p2)  ;;  %vm769_vm3 = vcmask (!%p191_p2), 7168  }
   0xb   : > { %984 = vmatprep.subr.bf16.mxu1 (!%p191_p2), %v983_v4 }
   0xc   : > { %986 = vmatpush3.bf16.msra.mxu1 (!%p191_p2), %v983_v4 }
   0xd   : > { %988 = vmatprep.subr.bf16.mxu1 (!%p191_p2), %v987_v23 }
   0xf   : > { %s1255_s4 = smov (!%p219_p3, %s847_s4), 31 }
  0x10   : > { %s848_s28 = sshll.u32 %s1255_s4, 3  ;;  %990 = vmatpush3.bf16.msra.mxu1 %v987_v23 }
  0x11   : > { %s1129_s6 = scalar_lea.vmem %s1248_s0, %s848_s28  ;;  %s1209_s15 = scalar_lea.vmem %s1253_s5, %s848_s28 }
  0x12   : > { %v230_v5 = vld [vmem:[%s1129_s6] sm:$0xff]  ;;  %v231_v6 = vld [vmem:[%s1129_s6 + $0x8] sm:$0xff]  ;;  %v232_v7 = vld [vmem:[%s1129_s6 + $0x10] sm:$0xff] }
  0x13   : > { %927 = vmatprep.mubr.msk.f32.mxu0 %vm254_vm1, %v230_v5  ;;  %v233_v8 = vld [vmem:[%s1129_s6 + $0x18] sm:$0xff]  ;;  %v234_v9 = vld [vmem:[%s1129_s6 + $0x20] sm:$0xff]  ;;  %v235_v10 = vld [vmem:[%s1129_s6 + $0x28] sm:$0xff] }
  0x14   : > { %928 = vmatmul.mubr.msk.f32.vlgmr.msra.gmra.mrb[0].mxu0 %vm254_vm1, %v231_v6  ;;  %v236_v11 = vld [vmem:[%s1129_s6 + $0x30] sm:$0xff]  ;;  %v237_v12 = vld [vmem:[%s1129_s6 + $0x38] sm:$0xff]  ;;  %v238_v13 = vld [vmem:[%s1129_s6 + $0x40] sm:$0xff] }
  0x15   : > { %930 = vmatprep.mubr.msk.f32.mxu0 %vm254_vm1, %v232_v7  ;;  %v239_v14 = vld [vmem:[%s1129_s6 + $0x48] sm:$0xff]  ;;  %v240_v15 = vld [vmem:[%s1129_s6 + $0x50] sm:$0xff]  ;;  %v241_v16 = vld [vmem:[%s1129_s6 + $0x58] sm:$0xff] }
  0x16   : > { %v242_v17 = vld [vmem:[%s1129_s6 + $0x60] sm:$0xff]  ;;  %v243_v18 = vld [vmem:[%s1129_s6 + $0x68] sm:$0xff]  ;;  %v244_v19 = vld [vmem:[%s1129_s6 + $0x70] sm:$0xff] }
  0x17   : > { %v245_v20 = vld [vmem:[%s1129_s6 + $0x78] sm:$0xff] }
  0x18   : > { %931 = vmatmul.mubr.msk.f32.gmra.mrb[2].mxu0 %vm254_vm1, %v233_v8 }
  0x19   : > { %933 = vmatprep.mubr.msk.f32.mxu0 %vm254_vm1, %v234_v9  ;;  %v1188_v9 = vld [vmem:[#allocation2] ss:$0 sm:$0xff] }
  0x1c   : > { %934 = vmatmul.mubr.msk.f32.gmra.mrb[4].mxu0 %vm254_vm1, %v235_v10 }
  0x1d   : > { %936 = vmatprep.mubr.msk.f32.mxu0 %vm254_vm1, %v236_v11 }
  0x20   : > { %937 = vmatmul.mubr.msk.f32.gmra.mrb[6].mxu0 %vm254_vm1, %v237_v12 }
  0x21   : > { %939 = vmatprep.mubr.msk.f32.mxu0 %vm254_vm1, %v238_v13 }
  0x24   : > { %940 = vmatmul.mubr.msk.f32.gmra.mrb[8].mxu0 %vm254_vm1, %v239_v14 }
  0x25   : > { %942 = vmatprep.mubr.msk.f32.mxu0 %vm254_vm1, %v240_v15 }
  0x28   : > { %943 = vmatmul.mubr.msk.f32.gmra.mrb[10].mxu0 %vm254_vm1, %v241_v16 }
  0x29   : > { %945 = vmatprep.mubr.msk.f32.mxu0 %vm254_vm1, %v242_v17 }
  0x2c   : > { %946 = vmatmul.mubr.msk.f32.gmra.mrb[12].mxu0 %vm254_vm1, %v243_v18 }
  0x2d   : > { %948 = vmatprep.mubr.msk.f32.mxu0 %vm254_vm1, %v244_v19 }
  0x30   : > { %949 = vmatmul.mubr.msk.f32.gmra.mrb[14].mxu0 %vm254_vm1, %v245_v20 }
  0xe7   : > { %v929_v25 = vpop.f32.mrb[0].mxu0 }
  0xe8   : > { %v379_v26 = vadd.f32 %v929_v25, %v851_v24  ;;  %v373_v27 = vpop.f32.mrb[1].mxu0 }
  0xe9   : > { %v374_v28 = vadd.f32 %v851_v24, %v373_v27 }
  0xea   : > { %v453_v31 = vmax.f32 %v379_v26, 0.0 }
  0xeb   : > { %v452_v29 = vmax.f32 %v374_v28, 0.0  ;;  %v932_v30 = vpop.f32.mrb[2].mxu0 }
  0xec   : > { %v389_v32 = vadd.f32 %v932_v30, %v851_v24  ;;  %v383_v33 = vpop.f32.mrb[3].mxu0 }
  0xed   : > { %v384_v34 = vadd.f32 %v851_v24, %v383_v33  ;;  %959 = vmatprep.mubr.msk.f32.mxu1 %vm479_vm2, %v452_v29 }
  0xee   : > { %960 = vmatmul.mubr.msk.f32.vlgmr.msra.gmra.mrb[0].mxu1 %vm479_vm2, %v453_v31  ;;  %v455_v37 = vmax.f32 %v389_v32, 0.0 }
  0xef   : > { %v454_v35 = vmax.f32 %v384_v34, 0.0  ;;  %v935_v36 = vpop.f32.mrb[4].mxu0 }
  0xf0   : > { %v399_v38 = vadd.f32 %v935_v36, %v851_v24  ;;  %v393_v39 = vpop.f32.mrb[5].mxu0 }
  0xf1   : > { %v394_v40 = vadd.f32 %v851_v24, %v393_v39  ;;  %962 = vmatprep.mubr.msk.f32.mxu1 %vm479_vm2, %v454_v35 }
  0xf2   : > { %963 = vmatmul.mubr.msk.f32.gmra.mrb[2].mxu1 %vm479_vm2, %v455_v37  ;;  %v457_v43 = vmax.f32 %v399_v38, 0.0 }
  0xf3   : > { %v456_v41 = vmax.f32 %v394_v40, 0.0  ;;  %v938_v42 = vpop.f32.mrb[6].mxu0 }
  0xf4   : > { %v409_v44 = vadd.f32 %v938_v42, %v851_v24  ;;  %v403_v45 = vpop.f32.mrb[7].mxu0 }
  0xf5   : > { %v404_v46 = vadd.f32 %v851_v24, %v403_v45  ;;  %965 = vmatprep.mubr.msk.f32.mxu1 %vm479_vm2, %v456_v41 }
  0xf6   : > { %966 = vmatmul.mubr.msk.f32.gmra.mrb[4].mxu1 %vm479_vm2, %v457_v43  ;;  %v459_v49 = vmax.f32 %v409_v44, 0.0 }
  0xf7   : > { %v458_v47 = vmax.f32 %v404_v46, 0.0  ;;  %v941_v48 = vpop.f32.mrb[8].mxu0 }
  0xf8   : > { %v419_v50 = vadd.f32 %v941_v48, %v851_v24  ;;  %v413_v51 = vpop.f32.mrb[9].mxu0 }
  0xf9   : > { %v414_v52 = vadd.f32 %v851_v24, %v413_v51  ;;  %968 = vmatprep.mubr.msk.f32.mxu1 %vm479_vm2, %v458_v47 }
  0xfa   : > { %969 = vmatmul.mubr.msk.f32.gmra.mrb[6].mxu1 %vm479_vm2, %v459_v49  ;;  %v461_v55 = vmax.f32 %v419_v50, 0.0 }
  0xfb   : > { %v460_v53 = vmax.f32 %v414_v52, 0.0  ;;  %v944_v54 = vpop.f32.mrb[10].mxu0 }
  0xfc   : > { %v429_v56 = vadd.f32 %v944_v54, %v851_v24  ;;  %v423_v57 = vpop.f32.mrb[11].mxu0 }
  0xfd   : > { %v424_v58 = vadd.f32 %v851_v24, %v423_v57  ;;  %971 = vmatprep.mubr.msk.f32.mxu1 %vm479_vm2, %v460_v53 }
  0xfe   : > { %972 = vmatmul.mubr.msk.f32.gmra.mrb[8].mxu1 %vm479_vm2, %v461_v55  ;;  %v463_v61 = vmax.f32 %v429_v56, 0.0 }
  0xff   : > { %v462_v59 = vmax.f32 %v424_v58, 0.0  ;;  %v947_v60 = vpop.f32.mrb[12].mxu0 }
 0x100   : > { %v439_v62 = vadd.f32 %v947_v60, %v851_v24  ;;  %v433_v63 = vpop.f32.mrb[13].mxu0 }
 0x101   : > { %v434_v0 = vadd.f32 %v851_v24, %v433_v63  ;;  %974 = vmatprep.mubr.msk.f32.mxu1 %vm479_vm2, %v462_v59 }
 0x102   : > { %975 = vmatmul.mubr.msk.f32.gmra.mrb[10].mxu1 %vm479_vm2, %v463_v61  ;;  %v465_v3 = vmax.f32 %v439_v62, 0.0 }
 0x103   : > { %v464_v1 = vmax.f32 %v434_v0, 0.0  ;;  %v950_v2 = vpop.f32.mrb[14].mxu0 }
 0x104   : > { %v449_v4 = vadd.f32 %v950_v2, %v851_v24  ;;  %v443_v5 = vpop.f32.mrb[15].mxu0 }
 0x105   : > { %v444_v6 = vadd.f32 %v851_v24, %v443_v5  ;;  %977 = vmatprep.mubr.msk.f32.mxu1 %vm479_vm2, %v464_v1 }
 0x106   : > { %978 = vmatmul.mubr.msk.f32.gmra.mrb[12].mxu1 %vm479_vm2, %v465_v3  ;;  %v467_v8 = vmax.f32 %v449_v4, 0.0 }
 0x107   : > { %v466_v7 = vmax.f32 %v444_v6, 0.0 }
 0x109   : > { %980 = vmatprep.mubr.msk.f32.mxu1 %vm479_vm2, %v466_v7 }
 0x10a   : > { %981 = vmatmul.mubr.msk.f32.gmra.mrb[14].mxu1 %vm479_vm2, %v467_v8 }
 0x1c1   : > { %v961_v10 = vpop.f32.mrb[0].mxu1 }
 0x1c2   : > { %v600_v11 = vadd.f32 %v961_v10, %v1188_v9  ;;  %v594_v12 = vpop.f32.mrb[1].mxu1 }
 0x1c3   : > { %v595_v13 = vadd.f32 %v1188_v9, %v594_v12 }
 0x1c4   : > { %v674_v14 = vsub.f32 0.0, %v600_v11 }
 0x1c5   : > { %v673_v15 = vsub.f32 0.0, %v595_v13  ;;  %v964_v16 = vpop.f32.mrb[2].mxu1 }
 0x1c6   : > { %v691_v17 = vmul.f32 1.442695, %v674_v14  ;;  %v610_v18 = vadd.f32 %v964_v16, %v1188_v9  ;;  %v604_v19 = vpop.f32.mrb[3].mxu1 }
 0x1c7   : > { %v689_v20 = vmul.f32 1.442695, %v673_v15  ;;  %v605_v21 = vadd.f32 %v1188_v9, %v604_v19 }
 0x1c8   : > { %999 = vpow2.f32 %v691_v17  ;;  %v676_v22 = vsub.f32 0.0, %v610_v18 }
 0x1c9   : > { %1001 = vpow2.f32 %v689_v20  ;;  %v675_v23 = vsub.f32 0.0, %v605_v21  ;;  %v967_v24 = vpop.f32.mrb[4].mxu1 }
 0x1ca   : > { %v695_v25 = vmul.f32 1.442695, %v676_v22  ;;  %v620_v26 = vadd.f32 %v967_v24, %v1188_v9  ;;  %v614_v27 = vpop.f32.mrb[5].mxu1 }
 0x1cb   : > { %v693_v28 = vmul.f32 1.442695, %v675_v23  ;;  %v615_v29 = vadd.f32 %v1188_v9, %v614_v27 }
 0x1cc   : > { %1003 = vpow2.f32 %v695_v25  ;;  %v678_v30 = vsub.f32 0.0, %v620_v26 }
 0x1cd   : > { %1005 = vpow2.f32 %v693_v28  ;;  %v677_v31 = vsub.f32 0.0, %v615_v29  ;;  %v970_v32 = vpop.f32.mrb[6].mxu1 }
 0x1ce   : > { %v699_v33 = vmul.f32 1.442695, %v678_v30  ;;  %v630_v34 = vadd.f32 %v970_v32, %v1188_v9  ;;  %v624_v35 = vpop.f32.mrb[7].mxu1 }
 0x1cf   : > { %v697_v36 = vmul.f32 1.442695, %v677_v31  ;;  %v625_v37 = vadd.f32 %v1188_v9, %v624_v35 }
 0x1d0   : > { %1007 = vpow2.f32 %v699_v33  ;;  %v680_v38 = vsub.f32 0.0, %v630_v34 }
 0x1d1   : > { %1009 = vpow2.f32 %v697_v36  ;;  %v679_v39 = vsub.f32 0.0, %v625_v37  ;;  %v973_v40 = vpop.f32.mrb[8].mxu1 }
 0x1d2   : > { %v1000_v41 = vpop.eup %999  ;;  %v703_v42 = vmul.f32 1.442695, %v680_v38  ;;  %v640_v43 = vadd.f32 %v973_v40, %v1188_v9  ;;  %v634_v44 = vpop.f32.mrb[9].mxu1 }
 0x1d3   : > { %v1002_v45 = vpop.eup %1001  ;;  %v722_v46 = vadd.f32 1.0, %v1000_v41  ;;  %v701_v47 = vmul.f32 1.442695, %v679_v39  ;;  %v635_v48 = vadd.f32 %v1188_v9, %v634_v44 }
 0x1d4   : > { %v721_v49 = vadd.f32 1.0, %v1002_v45  ;;  %1011 = vpow2.f32 %v703_v42  ;;  %v682_v50 = vsub.f32 0.0, %v640_v43 }
 0x1d5   : > { %1013 = vrcp.f32 %v722_v46  ;;  %v681_v51 = vsub.f32 0.0, %v635_v48  ;;  %v976_v52 = vpop.f32.mrb[10].mxu1 }
 0x1d6   : > { %v1004_v53 = vpop.eup %1003  ;;  %1015 = vrcp.f32 %v721_v49  ;;  %v707_v54 = vmul.f32 1.442695, %v682_v50  ;;  %v650_v55 = vadd.f32 %v976_v52, %v1188_v9  ;;  %v644_v56 = vpop.f32.mrb[11].mxu1 }
 0x1d7   : > { %v1006_v57 = vpop.eup %1005  ;;  %v724_v58 = vadd.f32 1.0, %v1004_v53  ;;  %1017 = vpow2.f32 %v701_v47  ;;  %v705_v59 = vmul.f32 1.442695, %v681_v51  ;;  %v645_v60 = vadd.f32 %v1188_v9, %v644_v56 }
 0x1d8   : > { %v723_v61 = vadd.f32 1.0, %v1006_v57  ;;  %1019 = vpow2.f32 %v707_v54  ;;  %v684_v62 = vsub.f32 0.0, %v650_v55 }
 0x1d9   : > { %1021 = vrcp.f32 %v724_v58  ;;  %v683_v63 = vsub.f32 0.0, %v645_v60  ;;  %v979_v0 = vpop.f32.mrb[12].mxu1 }
 0x1da   : > { %v1008_v1 = vpop.eup %1007  ;;  %1023 = vrcp.f32 %v723_v61  ;;  %v711_v2 = vmul.f32 1.442695, %v684_v62  ;;  %v660_v3 = vadd.f32 %v979_v0, %v1188_v9  ;;  %v654_v4 = vpop.f32.mrb[13].mxu1 }
 0x1db   : > { %v1010_v5 = vpop.eup %1009  ;;  %v726_v6 = vadd.f32 1.0, %v1008_v1  ;;  %1025 = vpow2.f32 %v705_v59  ;;  %v709_v7 = vmul.f32 1.442695, %v683_v63  ;;  %v655_v8 = vadd.f32 %v1188_v9, %v654_v4 }
 0x1dc   : > { %v725_v10 = vadd.f32 1.0, %v1010_v5  ;;  %1027 = vpow2.f32 %v711_v2  ;;  %v686_v11 = vsub.f32 0.0, %v660_v3 }
 0x1dd   : > { %1029 = vrcp.f32 %v726_v6  ;;  %v685_v12 = vsub.f32 0.0, %v655_v8  ;;  %v982_v13 = vpop.f32.mrb[14].mxu1 }
 0x1de   : > { %v1012_v14 = vpop.eup %1011  ;;  %1031 = vrcp.f32 %v725_v10  ;;  %v715_v15 = vmul.f32 1.442695, %v686_v11  ;;  %v670_v16 = vadd.f32 %v982_v13, %v1188_v9  ;;  %v664_v17 = vpop.f32.mrb[15].mxu1 }
 0x1df   : > { %v1014_v18 = vpop.eup %1013  ;;  %v728_v19 = vadd.f32 1.0, %v1012_v14  ;;  %1033 = vpow2.f32 %v709_v7  ;;  %v713_v20 = vmul.f32 1.442695, %v685_v12  ;;  %v665_v21 = vadd.f32 %v1188_v9, %v664_v17 }
 0x1e0   : > { %v1016_v22 = vpop.eup %1015  ;;  %771 = vst.msk [vmem:[%s1209_s15 + $0x8] sm:$0xff] %vm769_vm3, %v1014_v18  ;;  %1035 = vpow2.f32 %v715_v15  ;;  %v688_v23 = vsub.f32 0.0, %v670_v16 }
 0x1e1   : > { %v1018_v24 = vpop.eup %1017  ;;  %770 = vst.msk [vmem:[%s1209_s15] sm:$0xff] %vm769_vm3, %v1016_v22  ;;  %1037 = vrcp.f32 %v728_v19  ;;  %v687_v25 = vsub.f32 0.0, %v665_v21 }
 0x1e2   : > { %v1020_v26 = vpop.eup %1019  ;;  %v727_v27 = vadd.f32 1.0, %v1018_v24  ;;  %1039 = vpow2.f32 %v713_v20  ;;  %v719_v28 = vmul.f32 1.442695, %v688_v23 }
 0x1e3   : > { %v1022_v29 = vpop.eup %1021  ;;  %v730_v30 = vadd.f32 1.0, %v1020_v26  ;;  %v717_v9 = vmul.f32 1.442695, %v687_v25 }
 0x1e4   : > { %v1024_v31 = vpop.eup %1023  ;;  %773 = vst.msk [vmem:[%s1209_s15 + $0x18] sm:$0xff] %vm769_vm3, %v1022_v29  ;;  %1041 = vrcp.f32 %v727_v27 }
 0x1e5   : > { %v1026_v32 = vpop.eup %1025  ;;  %772 = vst.msk [vmem:[%s1209_s15 + $0x10] sm:$0xff] %vm769_vm3, %v1024_v31  ;;  %1043 = vrcp.f32 %v730_v30 }
 0x1e6   : > { %v1028_v33 = vpop.eup %1027  ;;  %v729_v34 = vadd.f32 1.0, %v1026_v32  ;;  %1045 = vpow2.f32 %v719_v28 }
 0x1e7   : > { %v1030_v35 = vpop.eup %1029  ;;  %v732_v36 = vadd.f32 1.0, %v1028_v33  ;;  %1047 = vpow2.f32 %v717_v9 }
 0x1e8   : > { %v1032_v37 = vpop.eup %1031  ;;  %775 = vst.msk [vmem:[%s1209_s15 + $0x28] sm:$0xff] %vm769_vm3, %v1030_v35  ;;  %1049 = vrcp.f32 %v729_v34 }
 0x1e9   : > { %v1034_v38 = vpop.eup %1033  ;;  %774 = vst.msk [vmem:[%s1209_s15 + $0x20] sm:$0xff] %vm769_vm3, %v1032_v37  ;;  %1051 = vrcp.f32 %v732_v36 }
 0x1ea   : > { %v1036_v39 = vpop.eup %1035  ;;  %v731_v40 = vadd.f32 1.0, %v1034_v38 }
 0x1eb   : > { %v1038_v41 = vpop.eup %1037  ;;  %v734_v42 = vadd.f32 1.0, %v1036_v39 }
 0x1ec   : > { %v1040_v43 = vpop.eup %1039  ;;  %777 = vst.msk [vmem:[%s1209_s15 + $0x38] sm:$0xff] %vm769_vm3, %v1038_v41  ;;  %1053 = vrcp.f32 %v731_v40 }
 0x1ed   : > { %1055 = vrcp.f32 %v734_v42  ;;  %v733_v44 = vadd.f32 1.0, %v1040_v43 }
 0x1ee   : > { %v1042_v45 = vpop.eup %1041 }
 0x1ef   : > { %v1044_v46 = vpop.eup %1043  ;;  %776 = vst.msk [vmem:[%s1209_s15 + $0x30] sm:$0xff] %vm769_vm3, %v1042_v45  ;;  %1057 = vrcp.f32 %v733_v44 }
 0x1f0   : > { %v1046_v47 = vpop.eup %1045  ;;  %779 = vst.msk [vmem:[%s1209_s15 + $0x48] sm:$0xff] %vm769_vm3, %v1044_v46 }
 0x1f1   : > { %v1048_v48 = vpop.eup %1047  ;;  %v736_v49 = vadd.f32 1.0, %v1046_v47 }
 0x1f2   : > { %v1050_v50 = vpop.eup %1049  ;;  %v735_v51 = vadd.f32 1.0, %v1048_v48 }
 0x1f3   : > { %v1052_v52 = vpop.eup %1051  ;;  %778 = vst.msk [vmem:[%s1209_s15 + $0x40] sm:$0xff] %vm769_vm3, %v1050_v50  ;;  %1059 = vrcp.f32 %v736_v49 }
 0x1f4   : > { %781 = vst.msk [vmem:[%s1209_s15 + $0x58] sm:$0xff] %vm769_vm3, %v1052_v52  ;;  %1061 = vrcp.f32 %v735_v51 }
 0x1f6   : > { %v1054_v53 = vpop.eup %1053 }
 0x1f7   : > { %v1056_v54 = vpop.eup %1055  ;;  %780 = vst.msk [vmem:[%s1209_s15 + $0x50] sm:$0xff] %vm769_vm3, %v1054_v53 }
 0x1f8   : > { %783 = vst.msk [vmem:[%s1209_s15 + $0x68] sm:$0xff] %vm769_vm3, %v1056_v54 }
 0x1f9   : > { %v1058_v55 = vpop.eup %1057 }
 0x1fa   : > { %782 = vst.msk [vmem:[%s1209_s15 + $0x60] sm:$0xff] %vm769_vm3, %v1058_v55 }
 0x1fd   : > { %v1060_v56 = vpop.eup %1059 }
 0x1fe   : > { %v1062_v57 = vpop.eup %1061  ;;  %785 = vst.msk [vmem:[%s1209_s15 + $0x78] sm:$0xff] %vm769_vm3, %v1060_v56 }
 0x1ff   : > { %784 = vst.msk [vmem:[%s1209_s15 + $0x70] sm:$0xff] %vm769_vm3, %v1062_v57 }
 0x200 PF: > { %s17_s20 = sadd.s32 1, %s1069_s20  }
 0x201   : > { %p14_p4 = scmp.ge.s32.totalorder %s17_s20, 4  }
 0x203   :  { %16 = sbr.rel (!%p14_p4) target bundleno = 3 (0x3), region = 70 }

</bundles_post_ra>
